<compile_context>
chip_gen: v7x
topology: tpu7x:2x2x1
jax: 0.10.0
libtpu: 0.0.40
codegen_flags: <defaults>
</compile_context>

<pallas_src>
import jax
import jax.numpy as jnp
from jax.experimental import pallas as pl
from jax.experimental.pallas import tpu as pltpu

FEATURES = 64


def score_kernel(x_ref, w1t_ref, b1_ref, w2t_ref, b2_ref,
                 w3t_ref, b3_ref, w4t_ref, b4_ref, o_ref):
    # x_ref:  (2, tm)        rows of the sample on sublanes, samples on lanes
    # w1t:    (64, 2)  b1:   (64, 1)   (sigma already folded into b1)
    # w2t/w3t:(64, 64) b2/b3:(64, 1)
    # w4t:    (2, 64)  b4:   (2, 1)
    # o_ref:  (2, tm)
    x0 = x_ref[0:1, :]                      # (1, tm)
    x1 = x_ref[1:2, :]                      # (1, tm)

    # Layer 1 on the VPU: two broadcast FMAs (K=2 matmul would waste the MXU).
    h = w1t_ref[:, 0:1] * x0 + w1t_ref[:, 1:2] * x1 + b1_ref[...]   # (64, tm) f32
    h = jnp.maximum(h, 0.0)

    mxu_dtype = w2t_ref.dtype               # f32 or bf16 (wrapper decides)

    # Layers 2/3/4 on the MXU: (out, 64) @ (64, tm), f32 accumulation.
    h = jnp.dot(w2t_ref[...], h.astype(mxu_dtype),
                preferred_element_type=jnp.float32) + b2_ref[...]
    h = jnp.maximum(h, 0.0)
    h = jnp.dot(w3t_ref[...], h.astype(mxu_dtype),
                preferred_element_type=jnp.float32) + b3_ref[...]
    h = jnp.maximum(h, 0.0)
    o_ref[...] = (jnp.dot(w4t_ref[...], h.astype(mxu_dtype),
                          preferred_element_type=jnp.float32) + b4_ref[...])


def init_params(key, features=FEATURES):
    """Deterministic synthetic parameters (same shapes as the nn.Module)."""
    ks = jax.random.split(key, 8)
    def lin(kw, kb, fan_in, fan_out):
        bound = 1.0 / jnp.sqrt(fan_in)
        w = jax.random.uniform(kw, (fan_in, fan_out), jnp.float32, -bound, bound)
        b = jax.random.uniform(kb, (1, fan_out), jnp.float32, -bound, bound)
        return w, b
    w1, b1 = lin(ks[0], ks[1], 3, features)
    w2, b2 = lin(ks[2], ks[3], features, features)
    w3, b3 = lin(ks[4], ks[5], features, features)
    w4, b4 = lin(ks[6], ks[7], features, 2)
    return (w1, b1, w2, b2, w3, b3, w4, b4)


def score_forward(x, sigma, params, *, tm=256, use_bf16=False):
    """x: (N, 2) float32, sigma: python/JAX scalar. Returns (N, 2) float32."""
    n = x.shape[0]
    assert n % tm == 0, "N must be divisible by the row tile"
    # TODO(synk): handle a remainder tile / pad N for non-multiple batch sizes.
    w1, b1, w2, b2, w3, b3, w4, b4 = params          # (in, out) / (1, out)
    feat = w1.shape[1]

    # Fold sigma into the layer-1 bias: hstack((x, sigma)) @ w1 + b1
    #   == x @ w1[:2] + (b1 + sigma * w1[2:3]).  No concat, K shrinks 3 -> 2.
    b1_eff = (b1 + sigma * w1[2:3, :]).T             # (feat, 1)
    w1t = w1[:2, :].T                                # (feat, 2)
    w2t, b2t = w2.T, b2.T                            # (feat, feat), (feat, 1)
    w3t, b3t = w3.T, b3.T
    w4t, b4t = w4.T, b4.T                            # (2, feat), (2, 1)

    if use_bf16:                                     # MXU operands only; f32 accum
        w2t = w2t.astype(jnp.bfloat16)
        w3t = w3t.astype(jnp.bfloat16)
        w4t = w4t.astype(jnp.bfloat16)

    x_t = x.T                                        # (2, N): lane-dense sample axis

    weight_spec = lambda shape: pl.BlockSpec(shape, lambda i: (0, 0))

    out_t = pl.pallas_call(
        score_kernel,
        out_shape=jax.ShapeDtypeStruct((2, n), jnp.float32),
        grid_spec=pltpu.PrefetchScalarGridSpec(
            num_scalar_prefetch=0,
            grid=(n // tm,),
            in_specs=[
                pl.BlockSpec((2, tm), lambda i: (0, i)),   # sample tile, lane-dense
                weight_spec((feat, 2)),    weight_spec((feat, 1)),
                weight_spec((feat, feat)), weight_spec((feat, 1)),
                weight_spec((feat, feat)), weight_spec((feat, 1)),
                weight_spec((2, feat)),    weight_spec((2, 1)),
            ],
            out_specs=pl.BlockSpec((2, tm), lambda i: (0, i)),
        ),
        compiler_params=pltpu.CompilerParams(
            dimension_semantics=("parallel",)),
    )(x_t, w1t, b1_eff, w2t, b2t, w3t, b3t, w4t, b4t)

    return out_t.T                                   # back to (N, 2) module layout


def score_ref(x, sigma, params):
    """Pure-JAX reference for correctness checking (mirrors the nn.Module)."""
    w1, b1, w2, b2, w3, b3, w4, b4 = params
    sigma_col = jnp.full((x.shape[0], 1), sigma, dtype=x.dtype)
    h = jnp.concatenate([x, sigma_col], axis=1)
    h = jnp.maximum(h @ w1 + b1, 0.0)
    h = jnp.maximum(h @ w2 + b2, 0.0)
    h = jnp.maximum(h @ w3 + b3, 0.0)
    return h @ w4 + b4


if __name__ == "__main__":
    key = jax.random.PRNGKey(0)
    kp, kx = jax.random.split(key)
    params = init_params(kp, FEATURES)

    n = 512                       # small; grid has 2 steps at tm=256 (v7x 2-TC)
    tm = 256
    x = jax.random.normal(kx, (n, 2), dtype=jnp.float32)
    sigma = 0.25                  # sigma_at_level[0]

    ref = score_ref(x, sigma, params)

    # f32 MXU path: tight check.
    out_f32 = jax.block_until_ready(
        score_forward(x, sigma, params, tm=tm, use_bf16=False))
    assert out_f32.shape == (n, 2)
    assert jnp.allclose(out_f32, ref, atol=1e-5, rtol=1e-5), "f32 mismatch vs reference"

    # bf16 MXU-operand path (f32 accumulation): loose check.
    out_bf16 = jax.block_until_ready(
        score_forward(x, sigma, params, tm=tm, use_bf16=True))
    assert out_bf16.shape == (n, 2)
    assert jnp.allclose(out_bf16, ref, atol=5e-2, rtol=5e-2), "bf16 mismatch vs reference"

    print("KERNEL_OK")
</pallas_src>

<mosaic_0001>
module attributes {stable_mosaic.version = 11 : i64} {
  func.func @score_kernel(%arg0: i32, %arg1: memref<2x256xf32, #tpu.memory_space<vmem>>, %arg2: memref<64x2xf32, #tpu.memory_space<vmem>>, %arg3: memref<64x1xf32, #tpu.memory_space<vmem>>, %arg4: memref<64x64xf32, #tpu.memory_space<vmem>>, %arg5: memref<64x1xf32, #tpu.memory_space<vmem>>, %arg6: memref<64x64xf32, #tpu.memory_space<vmem>>, %arg7: memref<64x1xf32, #tpu.memory_space<vmem>>, %arg8: memref<2x64xf32, #tpu.memory_space<vmem>>, %arg9: memref<2x1xf32, #tpu.memory_space<vmem>>, %arg10: memref<2x256xf32, #tpu.memory_space<vmem>>) attributes {dimension_semantics = [#tpu.dimension_semantics<parallel>], iteration_bounds = array<i64: 2>, scalar_prefetch = 0 : i64, scratch_operands = 0 : i64, tpu.core_type = #tpu.core_type<tc>, window_params = [{transform_indices = @transform_0, window_bounds = array<i64: 2, 256>}, {pipeline_mode = #tpu.pipeline_mode<synchronous>, transform_indices = @transform_1, window_bounds = array<i64: 64, 2>}, {pipeline_mode = #tpu.pipeline_mode<synchronous>, transform_indices = @transform_2, window_bounds = array<i64: 64, 1>}, {pipeline_mode = #tpu.pipeline_mode<synchronous>, transform_indices = @transform_3, window_bounds = array<i64: 64, 64>}, {pipeline_mode = #tpu.pipeline_mode<synchronous>, transform_indices = @transform_4, window_bounds = array<i64: 64, 1>}, {pipeline_mode = #tpu.pipeline_mode<synchronous>, transform_indices = @transform_5, window_bounds = array<i64: 64, 64>}, {pipeline_mode = #tpu.pipeline_mode<synchronous>, transform_indices = @transform_6, window_bounds = array<i64: 64, 1>}, {pipeline_mode = #tpu.pipeline_mode<synchronous>, transform_indices = @transform_7, window_bounds = array<i64: 2, 64>}, {pipeline_mode = #tpu.pipeline_mode<synchronous>, transform_indices = @transform_8, window_bounds = array<i64: 2, 1>}, {transform_indices = @transform_9, window_bounds = array<i64: 2, 256>}]} {
    %c0 = arith.constant 0 : index
    %c0_0 = arith.constant 0 : index
    %0 = vector.load %arg1[%c0, %c0_0] : memref<2x256xf32, #tpu.memory_space<vmem>>, vector<1x256xf32>
    %c1 = arith.constant 1 : index
    %c0_1 = arith.constant 0 : index
    %1 = vector.load %arg1[%c1, %c0_1] : memref<2x256xf32, #tpu.memory_space<vmem>>, vector<1x256xf32>
    %c0_2 = arith.constant 0 : index
    %c0_3 = arith.constant 0 : index
    %2 = vector.load %arg2[%c0_2, %c0_3] : memref<64x2xf32, #tpu.memory_space<vmem>>, vector<64x1xf32>
    %3 = vector.broadcast %2 : vector<64x1xf32> to vector<64x256xf32>
    %4 = vector.broadcast %0 : vector<1x256xf32> to vector<64x256xf32>
    %5 = arith.mulf %3, %4 : vector<64x256xf32>
    %c0_4 = arith.constant 0 : index
    %c1_5 = arith.constant 1 : index
    %6 = vector.load %arg2[%c0_4, %c1_5] : memref<64x2xf32, #tpu.memory_space<vmem>>, vector<64x1xf32>
    %7 = vector.broadcast %6 : vector<64x1xf32> to vector<64x256xf32>
    %8 = vector.broadcast %1 : vector<1x256xf32> to vector<64x256xf32>
    %9 = arith.mulf %7, %8 : vector<64x256xf32>
    %10 = arith.addf %5, %9 : vector<64x256xf32>
    %c0_6 = arith.constant 0 : index
    %c0_7 = arith.constant 0 : index
    %11 = vector.load %arg3[%c0_6, %c0_7] : memref<64x1xf32, #tpu.memory_space<vmem>>, vector<64x1xf32>
    %12 = vector.broadcast %11 : vector<64x1xf32> to vector<64x256xf32>
    %13 = arith.addf %10, %12 : vector<64x256xf32>
    %cst = arith.constant 0.000000e+00 : f32
    %14 = vector.broadcast %cst : f32 to vector<64x256xf32>
    %15 = arith.maximumf %13, %14 : vector<64x256xf32>
    %c0_8 = arith.constant 0 : index
    %c0_9 = arith.constant 0 : index
    %16 = vector.load %arg4[%c0_8, %c0_9] : memref<64x64xf32, #tpu.memory_space<vmem>>, vector<64x64xf32>
    %cst_10 = arith.constant dense<0.000000e+00> : vector<64x256xf32>
    %17 = tpu.matmul %16, %15, %cst_10 {dimension_numbers = #tpu.dot_dimension_numbers<[1], [0], [0], [1], [0, 0, 1, 1], [], []>} : vector<64x64xf32>, vector<64x256xf32>, vector<64x256xf32> -> vector<64x256xf32>
    %c0_11 = arith.constant 0 : index
    %c0_12 = arith.constant 0 : index
    %18 = vector.load %arg5[%c0_11, %c0_12] : memref<64x1xf32, #tpu.memory_space<vmem>>, vector<64x1xf32>
    %19 = vector.broadcast %18 : vector<64x1xf32> to vector<64x256xf32>
    %20 = arith.addf %17, %19 : vector<64x256xf32>
    %cst_13 = arith.constant 0.000000e+00 : f32
    %21 = vector.broadcast %cst_13 : f32 to vector<64x256xf32>
    %22 = arith.maximumf %20, %21 : vector<64x256xf32>
    %c0_14 = arith.constant 0 : index
    %c0_15 = arith.constant 0 : index
    %23 = vector.load %arg6[%c0_14, %c0_15] : memref<64x64xf32, #tpu.memory_space<vmem>>, vector<64x64xf32>
    %cst_16 = arith.constant dense<0.000000e+00> : vector<64x256xf32>
    %24 = tpu.matmul %23, %22, %cst_16 {dimension_numbers = #tpu.dot_dimension_numbers<[1], [0], [0], [1], [0, 0, 1, 1], [], []>} : vector<64x64xf32>, vector<64x256xf32>, vector<64x256xf32> -> vector<64x256xf32>
    %c0_17 = arith.constant 0 : index
    %c0_18 = arith.constant 0 : index
    %25 = vector.load %arg7[%c0_17, %c0_18] : memref<64x1xf32, #tpu.memory_space<vmem>>, vector<64x1xf32>
    %26 = vector.broadcast %25 : vector<64x1xf32> to vector<64x256xf32>
    %27 = arith.addf %24, %26 : vector<64x256xf32>
    %cst_19 = arith.constant 0.000000e+00 : f32
    %28 = vector.broadcast %cst_19 : f32 to vector<64x256xf32>
    %29 = arith.maximumf %27, %28 : vector<64x256xf32>
    %c0_20 = arith.constant 0 : index
    %c0_21 = arith.constant 0 : index
    %30 = vector.load %arg8[%c0_20, %c0_21] : memref<2x64xf32, #tpu.memory_space<vmem>>, vector<2x64xf32>
    %cst_22 = arith.constant dense<0.000000e+00> : vector<2x256xf32>
    %31 = tpu.matmul %30, %29, %cst_22 {dimension_numbers = #tpu.dot_dimension_numbers<[1], [0], [0], [1], [0, 0, 1, 1], [], []>} : vector<2x64xf32>, vector<64x256xf32>, vector<2x256xf32> -> vector<2x256xf32>
    %c0_23 = arith.constant 0 : index
    %c0_24 = arith.constant 0 : index
    %32 = vector.load %arg9[%c0_23, %c0_24] : memref<2x1xf32, #tpu.memory_space<vmem>>, vector<2x1xf32>
    %33 = vector.broadcast %32 : vector<2x1xf32> to vector<2x256xf32>
    %34 = arith.addf %31, %33 : vector<2x256xf32>
    %c0_25 = arith.constant 0 : index
    %c0_26 = arith.constant 0 : index
    %35 = vector.load %arg10[%c0_25, %c0_26] : memref<2x256xf32, #tpu.memory_space<vmem>>, vector<2x256xf32>
    tpu.vector_store %arg10[%c0_25, %c0_26], %34 {strides = array<i32>} : memref<2x256xf32, #tpu.memory_space<vmem>>, vector<2x256xf32>,
    return
  }
  func.func @transform_0(%arg0: i32) -> (i32, i32) {
    %c0_i32 = arith.constant 0 : i32
    %c0_i32_0 = arith.constant 0 : i32
    return %c0_i32, %arg0 : i32, i32
  }
  func.func @transform_1(%arg0: i32) -> (i32, i32) {
    %c0_i32 = arith.constant 0 : i32
    %c0_i32_0 = arith.constant 0 : i32
    %c0_i32_1 = arith.constant 0 : i32
    return %c0_i32, %c0_i32_0 : i32, i32
  }
  func.func @transform_2(%arg0: i32) -> (i32, i32) {
    %c0_i32 = arith.constant 0 : i32
    %c0_i32_0 = arith.constant 0 : i32
    %c0_i32_1 = arith.constant 0 : i32
    return %c0_i32, %c0_i32_0 : i32, i32
  }
  func.func @transform_3(%arg0: i32) -> (i32, i32) {
    %c0_i32 = arith.constant 0 : i32
    %c0_i32_0 = arith.constant 0 : i32
    %c0_i32_1 = arith.constant 0 : i32
    return %c0_i32, %c0_i32_0 : i32, i32
  }
  func.func @transform_4(%arg0: i32) -> (i32, i32) {
    %c0_i32 = arith.constant 0 : i32
    %c0_i32_0 = arith.constant 0 : i32
    %c0_i32_1 = arith.constant 0 : i32
    return %c0_i32, %c0_i32_0 : i32, i32
  }
  func.func @transform_5(%arg0: i32) -> (i32, i32) {
    %c0_i32 = arith.constant 0 : i32
    %c0_i32_0 = arith.constant 0 : i32
    %c0_i32_1 = arith.constant 0 : i32
    return %c0_i32, %c0_i32_0 : i32, i32
  }
  func.func @transform_6(%arg0: i32) -> (i32, i32) {
    %c0_i32 = arith.constant 0 : i32
    %c0_i32_0 = arith.constant 0 : i32
    %c0_i32_1 = arith.constant 0 : i32
    return %c0_i32, %c0_i32_0 : i32, i32
  }
  func.func @transform_7(%arg0: i32) -> (i32, i32) {
    %c0_i32 = arith.constant 0 : i32
    %c0_i32_0 = arith.constant 0 : i32
    %c0_i32_1 = arith.constant 0 : i32
    return %c0_i32, %c0_i32_0 : i32, i32
  }
  func.func @transform_8(%arg0: i32) -> (i32, i32) {
    %c0_i32 = arith.constant 0 : i32
    %c0_i32_0 = arith.constant 0 : i32
    %c0_i32_1 = arith.constant 0 : i32
    return %c0_i32, %c0_i32_0 : i32, i32
  }
  func.func @transform_9(%arg0: i32) -> (i32, i32) {
    %c0_i32 = arith.constant 0 : i32
    %c0_i32_0 = arith.constant 0 : i32
    return %c0_i32, %arg0 : i32, i32
  }
}

</mosaic_0001>

<bundles_post_ra>
// kernel: tpu_custom_call.1
= control target key start
LH: loop header
LB: loop body
LE: loop exit
PB: predicated region body
PF: predicated region fallthrough
CT: control target
= control target key end

     0   :  { %14 = vsyncpa [#allocation3], 0  ;;  %s1734_s0 = inlined_call_operand.vmem [shape: f32[2,512], index: 0, kind: input, shape index: {}]   ;;  %s1735_s1 = inlined_call_operand.vmem [shape: f32[64,2], index: 1, kind: input, shape index: {}]   ;;  %s1736_s2 = inlined_call_operand.vmem [shape: f32[64,1], index: 2, kind: input, shape index: {}]   ;;  %s1737_s3 = inlined_call_operand.vmem [shape: f32[64,64], index: 3, kind: input, shape index: {}]   ;;  %s1738_s4 = inlined_call_operand.vmem [shape: f32[64,1], index: 4, kind: input, shape index: {}]   ;;  %s1739_s5 = inlined_call_operand.vmem [shape: f32[64,64], index: 5, kind: input, shape index: {}]   ;;  %s1740_s6 = inlined_call_operand.vmem [shape: f32[64,1], index: 6, kind: input, shape index: {}]   ;;  %s1741_s7 = inlined_call_operand.vmem [shape: f32[2,64], index: 7, kind: input, shape index: {}]   ;;  %s1742_s8 = inlined_call_operand.vmem [shape: f32[2,1], index: 8, kind: input, shape index: {}]   ;;  %s1743_s9 = inlined_call_operand.hbm [shape: f32[2,512], index: 9, kind: output, shape index: {}]  }
   0x1   :  { %16 = vsyncpa [#allocation3 + $0x1], 0  ;;  %s1403_s30 = smov 0   ;;  %s1405_s10 = smov 0  }
   0x2   :  { %s1407_s11 = smov 0   ;;  %s1409_s12 = smov 0  }
   0x3 LB: > { %s1424_s13 = sadd.s32 4294967295, %s1347_s12   ;;  %s1153_s14 = sadd.s32 4294967294, %s1347_s12   ;;  %s1347_s12 = sphi %s1409_s12, %s1749_s12   ;;  %s1343_s11 = sphi %s1407_s11, %s1748_s11   ;;  %s1339_s10 = sphi %s1405_s10, %s1747_s10   ;;  %s1335_s30 = sphi %s1403_s30, %s1746_s30  }
   0x4   : > { %s1428_s15 = sadd.s32 1, %s1347_s12   ;;  %s223_s16 = sadd.s32 1, %s1343_s11 }
   0x5   : > { %s220_s17 = ssub.s32 %s1347_s12, %s1428_s15  ;;  %p233_p0 = scmp.ne.s32.totalorder %s1343_s11, %s1339_s10 }
   0x6   : > { %p221_p1 = scmp.eq.s32.totalorder %s220_s17, 0  ;;  %p234_p2 = scmp.eq.s32.totalorder %s1424_s13, 1 }
   0x7   : > { %p239_p3 = scmp.ne.s32.totalorder %s1339_s10, %s1335_s30  ;;  %p240_p4 = scmp.eq.s32.totalorder %s1153_s14, 1 }
   0x8   : > { %s1439_s18 = scalar_select %p221_p1, %s1343_s11, %s223_s16  }
   0x9   : > { %p1441_p5 = por %p234_p2, %p233_p0  ;;  %p1445_p6 = por %p240_p4, %p239_p3 }
   0xa   : > { %p1156_p7 = scmp.ge.s32.totalorder %s1347_s12, 1  ;;  %p291_p8 = scmp.lt.s32.totalorder %s1347_s12, 3 }
   0xc   : > { %p292_p9 = pnand %p1156_p7, %p291_p8 }
   0xd   : > { %v339_v0 = vld [vmem:[%s1735_s1 + $0x10] sm:$0xff] (!%p292_p9)  ;;  %v337_v1 = vld [vmem:[%s1735_s1] sm:$0xff] (!%p292_p9)  ;;  %v1349_v2 = vmov (!%p292_p9), 1   ;;  %v338_v4 = vld [vmem:[%s1735_s1 + $0x8] sm:$0xff] (!%p292_p9)  ;;  %v1350_v7 = vmov (!%p292_p9), 0   ;;  %v1351_v29 = vmov (!%p292_p9), 0.0   ;;  %v386_v38 = vlaneseq (!%p292_p9) }
   0xe   : > { %295 = sbr.rel (%p292_p9) target bundleno = 949 (0x3b5), region = 56  ;;  %1277 = vset.pattern.permute.xlu0 (!%p292_p9), %v1349_v2  ;;  %1275 = vset.pattern.permute.xlu1 (!%p292_p9), %v1349_v2  ;;  %v341_v3 = vld [vmem:[%s1735_s1 + $0x20] sm:$0xff] (!%p292_p9)  ;;  %v343_v5 = vld [vmem:[%s1735_s1 + $0x30] sm:$0xff] (!%p292_p9)  ;;  %v340_v6 = vld [vmem:[%s1735_s1 + $0x18] sm:$0xff] (!%p292_p9)  ;;  %s1158_s27 = sshll.u32 (!%p292_p9), %s1424_s13, 1  ;;  %vm623_vm0 = vcmask (!%p292_p9), 523264  }
   0xf   : > { %421 = vperm.xlu0 (!%p292_p9), %1277, %v339_v0   ;;  %413 = vperm.xlu1 (!%p292_p9), %1275, %v337_v1   ;;  %v487_v8 = vld [vmem:[%s1736_s2] sm:$0xff] (!%p292_p9)  ;;  %v488_v9 = vld [vmem:[%s1736_s2 + $0x8] sm:$0xff] (!%p292_p9)  ;;  %v490_v11 = vld [vmem:[%s1736_s2 + $0x18] sm:$0xff] (!%p292_p9)  ;;  %p328_p10 = scmp.lt.s32.totalorder (!%p292_p9), %s1158_s27, 3  ;;  %v387_v41 = vshrl.u32 (!%p292_p9), %v386_v38, 7  ;;  %s324_s14 = sand.u32 (!%p292_p9), 1, %s1339_s10  }
  0x10   : > { %v342_v10 = vld [vmem:[%s1735_s1 + $0x28] sm:$0xff] (!%p292_p9)  ;;  %v575_v13 = vld [vmem:[%s1738_s4] sm:$0xff] (!%p292_p9)  ;;  %v489_v14 = vld [vmem:[%s1736_s2 + $0x10] sm:$0xff] (!%p292_p9)  ;;  %712 = vmatprep.mubr.f32.mxu0 (!%p292_p9), %v1351_v29  ;;  %921 = vmatprep.mubr.f32.mxu1 (!%p292_p9), %v1351_v29  ;;  %s1184_s17 = sshll.u32 (!%p292_p9), %s1424_s13, 6  ;;  %s1080_s26 = scalar_lea.sflag (!%p292_p9), [#allocation3], %s324_s14 }
  0x11   : > { %v492_v12 = vld [vmem:[%s1736_s2 + $0x28] sm:$0xff] (!%p292_p9)  ;;  %v577_v15 = vld [vmem:[%s1738_s4 + $0x10] sm:$0xff] (!%p292_p9)  ;;  %v579_v16 = vld [vmem:[%s1738_s4 + $0x20] sm:$0xff] (!%p292_p9)  ;;  %v388_v44 = vsub.s32 (!%p292_p9), 0, %v387_v41  ;;  %v392_v45 = vsub.s32 (!%p292_p9), 1, %v387_v41  ;;  %s1692_s25 = scalar_lea.hbm (!%p292_p9), %s1743_s9, %s1184_s17  ;;  %s1352_s13 = smov (!%p292_p9), [#allocation2]  }
  0x12   : > { %v344_v17 = vld [vmem:[%s1735_s1 + $0x38] sm:$0xff] (!%p292_p9)  ;;  %v581_v18 = vld [vmem:[%s1738_s4 + $0x30] sm:$0xff] (!%p292_p9)  ;;  %v785_v19 = vld [vmem:[%s1740_s6] sm:$0xff] (!%p292_p9) }
  0x13   : > { %429 = vperm.xlu0 (!%p292_p9), %1277, %v341_v3   ;;  %417 = vperm.xlu1 (!%p292_p9), %1275, %v338_v4   ;;  %v491_v20 = vld [vmem:[%s1736_s2 + $0x20] sm:$0xff] (!%p292_p9)  ;;  %v787_v21 = vld [vmem:[%s1740_s6 + $0x10] sm:$0xff] (!%p292_p9)  ;;  %v494_v24 = vld [vmem:[%s1736_s2 + $0x38] sm:$0xff] (!%p292_p9) }
  0x14   : > { %v493_v22 = vld [vmem:[%s1736_s2 + $0x30] sm:$0xff] (!%p292_p9)  ;;  %v789_v23 = vld [vmem:[%s1740_s6 + $0x20] sm:$0xff] (!%p292_p9)  ;;  %v576_v26 = vld [vmem:[%s1738_s4 + $0x8] sm:$0xff] (!%p292_p9) }
  0x15   : > { %v791_v25 = vld [vmem:[%s1740_s6 + $0x30] sm:$0xff]  ;;  %v987_v27 = vld [vmem:[%s1742_s8] sm:$0x3]  ;;  %v578_v28 = vld [vmem:[%s1738_s4 + $0x18] sm:$0xff]  ;;  %s1751_s27 = smov (!%p328_p10, %s1158_s27), 3 }
  0x16   : > { %v580_v30 = vld [vmem:[%s1738_s4 + $0x28] sm:$0xff]  ;;  %v582_v31 = vld [vmem:[%s1738_s4 + $0x38] sm:$0xff]  ;;  %s1159_s28 = sshll.u32 %s1751_s27, 1 }
  0x17   : > { %437 = vperm.xlu0 %1277, %v343_v5   ;;  %1276 = vset.pattern.permute.xlu1 %v1350_v7  ;;  %v786_v32 = vld [vmem:[%s1740_s6 + $0x8] sm:$0xff]  ;;  %v788_v33 = vld [vmem:[%s1740_s6 + $0x18] sm:$0xff]  ;;  %s331_s16 = scalar_lea.vmem %s1734_s0, %s1159_s28  ;;  %s1289_s28 = sshll.u32 %s1352_s13, 4  ;;  %s1290_s28 = int_to_ptr.vmem [resolvable:$false] %s1289_s28 }
  0x18   : > { %362 = vperm.xlu1 %1276, %v340_v6   ;;  %v790_v34 = vld [vmem:[%s1740_s6 + $0x28] sm:$0xff]  ;;  %v792_v35 = vld [vmem:[%s1740_s6 + $0x38] sm:$0xff]  ;;  %v1160_v46 = vld [vmem:[%s331_s16 + $0x1] ss:$2 sm:$0x3]  ;;  %s1291_s29 = scalar_lea.vmem %s1290_s28, 128 }
  0x19   : > { %v334_v47 = vld [vmem:[%s331_s16] ss:$2 sm:$0x3]  ;;  %v1560_v50 = vrot.slane %v1160_v46, %v388_v44  ;;  %v1562_v51 = vrot.slane %v1160_v46, %v392_v45  ;;  %s1157_s16 = sshll.u32 %s324_s14, 2 }
  0x1a   : > { %v1564_v52 = vrot.slane %v334_v47, %v388_v44  ;;  %v1566_v53 = vrot.slane %v334_v47, %v392_v45  ;;  %s326_s21 = scalar_lea.vmem [#allocation2], %s1157_s16 }
  0x1b   : > { %1282 = vset.pattern.permute.xlu0 %v1350_v7  ;;  %s1094_s22 = sshll.u32 %s326_s21, 4  ;;  %s1694_s22 = int_to_ptr.vmem [resolvable:$true] %s1094_s22 }
  0x1c   : > { %347 = vperm.xlu0 %1282, %v337_v1   ;;  %1278 = vset.pattern.permute.xlu1 %v1349_v2  ;;  %s1285_s27 = scalar_lea.vmem %s1694_s22, 64  ;;  %p1292_p0 = scmp.lt.s32.totalorder %s1694_s22, %s1290_s28 }
  0x1d   : > { %425 = vperm.xlu1 %1278, %v340_v6   ;;  %p1286_p11 = scmp.ne.s32.totalorder %s1694_s22, %s1285_s27  ;;  %p1293_p1 = scmp.lt.s32.totalorder %s1291_s29, %s1285_s27 }
  0x1f   : > { %p1287_p12 = pnand %p1286_p11, %p1441_p5  ;;  %p1294_p2 = por %p1293_p1, %p1292_p0 }
  0x20   : > { %352 = vperm.xlu0 %1282, %v338_v4  }
  0x21   : > { %1279 = vset.pattern.permute.xlu1 %v1350_v7  ;;  %p1288_p13 = pneg %p1287_p12 }
  0x22   : > { %497 = vperm.xlu1 %1279, %v487_v8  }
  0x23   : > { %p1295_p3 = pnand %p1294_p2, %p1288_p13 }
  0x24   : > { %357 = vperm.xlu0 %1282, %v339_v0  }
  0x26   : > { %367 = vperm.xlu1 %1279, %v341_v3  }
  0x28   : > { %502 = vperm.xlu0 %1282, %v488_v9  }
  0x2a   : > { %372 = vperm.xlu1 %1279, %v342_v10  }
  0x2c   : > { %512 = vperm.xlu0 %1282, %v490_v11  }
  0x2e   : > { %1280 = vset.pattern.permute.xlu1 %v1349_v2 }
  0x2f   : > { %433 = vperm.xlu1 %1280, %v342_v10  }
  0x30   : > { %522 = vperm.xlu0 %1282, %v492_v12  }
  0x33   : > { %1281 = vset.pattern.permute.xlu1 %v1350_v7 }
  0x34   : > { %585 = vperm.xlu0 %1282, %v575_v13   ;;  %507 = vperm.xlu1 %1281, %v489_v14  }
  0x38   : > { %595 = vperm.xlu0 %1282, %v577_v15   ;;  %377 = vperm.xlu1 %1281, %v343_v5  }
  0x3c   : > { %605 = vperm.xlu0 %1282, %v579_v16   ;;  %382 = vperm.xlu1 %1281, %v344_v17  }
  0x40   : > { %615 = vperm.xlu0 %1282, %v581_v18   ;;  %1283 = vset.pattern.permute.xlu1 %v1349_v2 }
  0x41   : > { %441 = vperm.xlu1 %1283, %v344_v17  }
  0x44   : > { %795 = vperm.xlu0 %1282, %v785_v19  }
  0x45   : > { %1284 = vset.pattern.permute.xlu1 %v1350_v7 }
  0x46   : > { %517 = vperm.xlu1 %1284, %v491_v20  }
  0x48   : > { %805 = vperm.xlu0 %1282, %v787_v21  }
  0x4a   : > { %527 = vperm.xlu1 %1284, %v493_v22  }
  0x4c   : > { %815 = vperm.xlu0 %1282, %v789_v23  }
  0x4e   : > { %532 = vperm.xlu1 %1284, %v494_v24  }
  0x50   : > { %825 = vperm.xlu0 %1282, %v791_v25  }
  0x52   : > { %590 = vperm.xlu1 %1284, %v576_v26  }
  0x54   : > { %990 = vperm.xlu0 %1282, %v987_v27  }
  0x56   : > { %600 = vperm.xlu1 %1284, %v578_v28  }
  0x5a   : > { %610 = vperm.xlu1 %1284, %v580_v30  }
  0x5e   : > { %620 = vperm.xlu1 %1284, %v582_v31  }
  0x62   : > { %800 = vperm.xlu1 %1284, %v786_v32  }
  0x66   : > { %810 = vperm.xlu1 %1284, %v788_v33  }
  0x6a   : > { %820 = vperm.xlu1 %1284, %v790_v34  }
  0x6e   : > { %830 = vperm.xlu1 %1284, %v792_v35  }
  0x8e   : > { %v414_v36 = vpop.permute.xlu1 %413  ;;  %v422_v37 = vpop.permute.xlu0 %421 }
  0x8f   : > { %v455_v58 = vmul.f32 %v1560_v50, %v414_v36  ;;  %v456_v59 = vmul.f32 %v1562_v51, %v414_v36  ;;  %v459_v20 = vmul.f32 %v1560_v50, %v422_v37  ;;  %v460_v21 = vmul.f32 %v1562_v51, %v422_v37 }
  0x92   : > { %v418_v39 = vpop.permute.xlu1 %417  ;;  %v1553_v40 = vpop.permute.xlu0 %429 }
  0x93   : > { %v457_v63 = vmul.f32 %v1560_v50, %v418_v39  ;;  %v458_v0 = vmul.f32 %v1562_v51, %v418_v39 }
  0x96   : > { %v1555_v42 = vpop.permute.xlu0 %437 }
  0x97   : > { %v363_v43 = vpop.permute.xlu1 %362 }
  0x98   : > { %v402_v22 = vmul.f32 %v1564_v52, %v363_v43  ;;  %v403_v23 = vmul.f32 %v1566_v53, %v363_v43 }
  0x9b   : > { %v348_v48 = vpop.permute.xlu0 %347 }
  0x9c   : > { %v426_v49 = vpop.permute.xlu1 %425  ;;  %v396_v55 = vmul.f32 %v1564_v52, %v348_v48  ;;  %v397_v56 = vmul.f32 %v1566_v53, %v348_v48 }
  0x9d   : > { %v461_v16 = vmul.f32 %v1560_v50, %v426_v49  ;;  %v462_v17 = vmul.f32 %v1562_v51, %v426_v49 }
  0x9e   : > { %v471_v1 = vadd.f32 %v455_v58, %v396_v55  ;;  %v472_v2 = vadd.f32 %v456_v59, %v397_v56  ;;  %v463_v58 = vmul.f32 %v1560_v50, %v1553_v40  ;;  %v464_v59 = vmul.f32 %v1562_v51, %v1553_v40 }
  0x9f   : > { %v353_v54 = vpop.permute.xlu0 %352  ;;  %v477_v28 = vadd.f32 %v461_v16, %v402_v22  ;;  %v478_v30 = vadd.f32 %v462_v17, %v403_v23  ;;  %v467_v40 = vmul.f32 %v1560_v50, %v1555_v42 }
  0xa0   : > { %v398_v60 = vmul.f32 %v1564_v52, %v353_v54  ;;  %v399_v61 = vmul.f32 %v1566_v53, %v353_v54 }
  0xa1   : > { %v498_v57 = vpop.permute.xlu1 %497 }
  0xa2   : > { %v535_v4 = vadd.f32 %v498_v57, %v471_v1  ;;  %v536_v5 = vadd.f32 %v498_v57, %v472_v2  ;;  %v473_v6 = vadd.f32 %v457_v63, %v398_v60  ;;  %v474_v7 = vadd.f32 %v458_v0, %v399_v61 }
  0xa3   : > { %v358_v62 = vpop.permute.xlu0 %357 }
  0xa4   : > { %v551_v12 = vmax.f32 %v535_v4, 0.0  ;;  %v552_v14 = vmax.f32 %v536_v5, 0.0  ;;  %v400_v24 = vmul.f32 %v1564_v52, %v358_v62  ;;  %v401_v25 = vmul.f32 %v1566_v53, %v358_v62 }
  0xa5   : > { %v368_v3 = vpop.permute.xlu1 %367 }
  0xa6   : > { %v475_v33 = vadd.f32 %v459_v20, %v400_v24  ;;  %v476_v34 = vadd.f32 %v460_v21, %v401_v25  ;;  %v404_v60 = vmul.f32 %v1564_v52, %v368_v3  ;;  %v405_v61 = vmul.f32 %v1566_v53, %v368_v3 }
  0xa7   : > { %v503_v8 = vpop.permute.xlu0 %502 }
  0xa8   : > { %v537_v9 = vadd.f32 %v503_v8, %v473_v6  ;;  %v538_v10 = vadd.f32 %v503_v8, %v474_v7  ;;  %v479_v2 = vadd.f32 %v463_v58, %v404_v60  ;;  %v480_v4 = vadd.f32 %v464_v59, %v405_v61 }
  0xa9   : > { %v373_v11 = vpop.permute.xlu1 %372 }
  0xaa   : > { %v553_v13 = vmax.f32 %v537_v9, 0.0  ;;  %v554_v15 = vmax.f32 %v538_v10, 0.0  ;;  %v406_v54 = vmul.f32 %v1564_v52, %v373_v11  ;;  %v407_v55 = vmul.f32 %v1566_v53, %v373_v11 }
  0xab   : > { %v513_v27 = vpop.permute.xlu0 %512  ;;  %v468_v10 = vmul.f32 %v1562_v51, %v1555_v42 }
  0xac   : > { %v1185_v18 = vpack.c.bf16 %v554_v15, %v552_v14  ;;  %v1187_v19 = vpack.c.bf16 %v553_v13, %v551_v12  ;;  %v541_v31 = vadd.f32 %v513_v27, %v477_v28  ;;  %v542_v32 = vadd.f32 %v513_v27, %v478_v30 }
  0xae   : > { %v434_v26 = vpop.permute.xlu1 %433  ;;  %1186 = vmatprep.subr.bf16.mxu0 %v1185_v18  ;;  %v557_v38 = vmax.f32 %v541_v31, 0.0  ;;  %v558_v39 = vmax.f32 %v542_v32, 0.0 }
  0xaf   : > { %1188 = vmatpush1.bf16.msra.mxu0 %v1187_v19  ;;  %v465_v47 = vmul.f32 %v1560_v50, %v434_v26  ;;  %v466_v48 = vmul.f32 %v1562_v51, %v434_v26  ;;  %v523_v63 = vpop.permute.xlu0 %522 }
  0xb1   : > { %v481_v56 = vadd.f32 %v465_v47, %v406_v54  ;;  %v482_v57 = vadd.f32 %v466_v48, %v407_v55 }
  0xb3   : > { %v508_v35 = vpop.permute.xlu1 %507  ;;  %v545_v0 = vadd.f32 %v523_v63, %v481_v56  ;;  %v546_v1 = vadd.f32 %v523_v63, %v482_v57 }
  0xb4   : > { %v539_v36 = vadd.f32 %v508_v35, %v475_v33  ;;  %v540_v37 = vadd.f32 %v508_v35, %v476_v34  ;;  %v569_v34 = vld [vmem:[%s1737_s3 + $0x10] sm:$0xff]  ;;  %v570_v35 = vld [vmem:[%s1737_s3 + $0x18] sm:$0xff] }
  0xb5   : > { %v561_v3 = vmax.f32 %v545_v0, 0.0  ;;  %v562_v11 = vmax.f32 %v546_v1, 0.0 }
  0xb6   : > { %v555_v41 = vmax.f32 %v539_v36, 0.0  ;;  %v556_v43 = vmax.f32 %v540_v37, 0.0  ;;  %v571_v36 = vld [vmem:[%s1737_s3 + $0x20] sm:$0xff]  ;;  %v572_v37 = vld [vmem:[%s1737_s3 + $0x28] sm:$0xff] }
  0xb7   : > { %v378_v44 = vpop.permute.xlu1 %377 }
  0xb8   : > { %v1189_v45 = vpack.c.bf16 %v558_v39, %v556_v43  ;;  %v1191_v46 = vpack.c.bf16 %v557_v38, %v555_v41  ;;  %v408_v5 = vmul.f32 %v1564_v52, %v378_v44  ;;  %v409_v6 = vmul.f32 %v1566_v53, %v378_v44  ;;  %v573_v38 = vld [vmem:[%s1737_s3 + $0x30] sm:$0xff]  ;;  %v574_v39 = vld [vmem:[%s1737_s3 + $0x38] sm:$0xff]  ;;  %v586_v44 = vpop.permute.xlu0 %585 }
  0xba   : > { %1190 = vmatprep.subr.bf16.mxu0 %v1189_v45  ;;  %v483_v17 = vadd.f32 %v467_v40, %v408_v5  ;;  %v484_v18 = vadd.f32 %v468_v10, %v409_v6 }
  0xbb   : > { %v383_v49 = vpop.permute.xlu1 %382  ;;  %1192 = vmatpush1.bf16.msra.mxu0 %v1191_v46 }
  0xbc   : > { %v410_v19 = vmul.f32 %v1564_v52, %v383_v49  ;;  %v411_v20 = vmul.f32 %v1566_v53, %v383_v49  ;;  %v567_v52 = vld [vmem:[%s1737_s3] sm:$0xff]  ;;  %v568_v53 = vld [vmem:[%s1737_s3 + $0x8] sm:$0xff]  ;;  %v596_v63 = vpop.permute.xlu0 %595 }
  0xc0   : > { %v442_v62 = vpop.permute.xlu1 %441 }
  0xc1   : > { %v469_v12 = vmul.f32 %v1560_v50, %v442_v62  ;;  %v470_v13 = vmul.f32 %v1562_v51, %v442_v62 }
  0xc3   : > { %v485_v42 = vadd.f32 %v469_v12, %v410_v19  ;;  %v486_v25 = vadd.f32 %v470_v13, %v411_v20 }
  0xc5   : > { %v518_v7 = vpop.permute.xlu1 %517 }
  0xc6   : > { %v543_v8 = vadd.f32 %v518_v7, %v479_v2  ;;  %v544_v9 = vadd.f32 %v518_v7, %v480_v4 }
  0xc8   : > { %v559_v14 = vmax.f32 %v543_v8, 0.0  ;;  %v560_v15 = vmax.f32 %v544_v9, 0.0 }
  0xc9   : > { %v528_v16 = vpop.permute.xlu1 %527 }
  0xca   : > { %v1193_v21 = vpack.c.bf16 %v562_v11, %v560_v15  ;;  %v1195_v22 = vpack.c.bf16 %v561_v3, %v559_v14  ;;  %v547_v23 = vadd.f32 %v528_v16, %v483_v17  ;;  %v548_v24 = vadd.f32 %v528_v16, %v484_v18  ;;  %v606_v14 = vpop.permute.xlu0 %605 }
  0xcc   : > { %1194 = vmatprep.subr.bf16.mxu0 %v1193_v21  ;;  %v563_v27 = vmax.f32 %v547_v23, 0.0  ;;  %v564_v28 = vmax.f32 %v548_v24, 0.0 }
  0xcd   : > { %v533_v26 = vpop.permute.xlu1 %532  ;;  %1196 = vmatpush1.bf16.msra.mxu0 %v1195_v22 }
  0xce   : > { %v549_v50 = vadd.f32 %v533_v26, %v485_v42  ;;  %v550_v51 = vadd.f32 %v533_v26, %v486_v25 }
  0xd0   : > { %v565_v30 = vmax.f32 %v549_v50, 0.0  ;;  %v566_v31 = vmax.f32 %v550_v51, 0.0 }
  0xd1   : > { %v591_v46 = vpop.permute.xlu1 %590 }
  0xd2   : > { %v1197_v32 = vpack.c.bf16 %v566_v31, %v564_v28  ;;  %v1199_v33 = vpack.c.bf16 %v565_v30, %v563_v27  ;;  %v616_v27 = vpop.permute.xlu0 %615 }
  0xd4   : > { %1198 = vmatprep.subr.bf16.mxu0 %v1197_v32 }
  0xd5   : > { %1200 = vmatpush1.bf16.msra.mxu0 %v1199_v33  ;;  %v601_v2 = vpop.permute.xlu1 %600 }
  0xd8   : > { %1161 = vmatmul.mubr.msk.f32.vlgmr.msra.gmra.mrb[0].mxu0 %vm623_vm0, %v567_v52 }
  0xd9   : > { %718 = vmatprep.mubr.f32.mxu0 %v1351_v29  ;;  %v611_v17 = vpop.permute.xlu1 %610 }
  0xdc   : > { %1162 = vmatmul.mubr.msk.f32.gmra.mrb[2].mxu0 %vm623_vm0, %v568_v53 }
  0xdd   : > { %724 = vmatprep.mubr.f32.mxu0 %v1351_v29  ;;  %v621_v31 = vpop.permute.xlu1 %620 }
  0xe0   : > { %1163 = vmatmul.mubr.msk.f32.gmra.mrb[4].mxu0 %vm623_vm0, %v569_v34 }
  0xe1   : > { %730 = vmatprep.mubr.f32.mxu0 %v1351_v29 }
  0xe4   : > { %1164 = vmatmul.mubr.msk.f32.gmra.mrb[6].mxu0 %vm623_vm0, %v570_v35 }
  0xe5   : > { %736 = vmatprep.mubr.f32.mxu0 %v1351_v29 }
  0xe8   : > { %1165 = vmatmul.mubr.msk.f32.gmra.mrb[8].mxu0 %vm623_vm0, %v571_v36 }
  0xe9   : > { %742 = vmatprep.mubr.f32.mxu0 %v1351_v29 }
  0xec   : > { %1166 = vmatmul.mubr.msk.f32.gmra.mrb[10].mxu0 %vm623_vm0, %v572_v37 }
  0xed   : > { %748 = vmatprep.mubr.f32.mxu0 %v1351_v29 }
  0xf0   : > { %1167 = vmatmul.mubr.msk.f32.gmra.mrb[12].mxu0 %vm623_vm0, %v573_v38 }
  0xf1   : > { %754 = vmatprep.mubr.f32.mxu0 %v1351_v29 }
  0xf4   : > { %1168 = vmatmul.mubr.msk.f32.gmra.mrb[14].mxu0 %vm623_vm0, %v574_v39 }
  0xf5   : > { %1060 = vmatprep.mubr.f32.mxu0 %v1351_v29 }
 0x1ab   : > { %v714_v41 = vpop.f32.mrb[0].mxu0 }
 0x1ac   : > { %v716_v43 = vpop.f32.mrb[1].mxu0  ;;  %v715_v45 = vadd.f32 %v714_v41, %v586_v44 }
 0x1ad   : > { %v717_v47 = vadd.f32 %v716_v43, %v586_v44  ;;  %v777_v43 = vld [vmem:[%s1739_s5] sm:$0xff]  ;;  %v778_v44 = vld [vmem:[%s1739_s5 + $0x8] sm:$0xff] }
 0x1ae   : > { %v761_v56 = vmax.f32 %v715_v45, 0.0  ;;  %v779_v45 = vld [vmem:[%s1739_s5 + $0x10] sm:$0xff] }
 0x1af   : > { %v720_v48 = vpop.f32.mrb[2].mxu0  ;;  %v762_v58 = vmax.f32 %v717_v47, 0.0  ;;  %v781_v47 = vld [vmem:[%s1739_s5 + $0x20] sm:$0xff] }
 0x1b0   : > { %v721_v49 = vadd.f32 %v720_v48, %v591_v46  ;;  %v722_v54 = vpop.f32.mrb[3].mxu0  ;;  %v782_v48 = vld [vmem:[%s1739_s5 + $0x28] sm:$0xff] }
 0x1b1   : > { %v723_v55 = vadd.f32 %v722_v54, %v591_v46  ;;  %v780_v46 = vld [vmem:[%s1739_s5 + $0x18] sm:$0xff] }
 0x1b2   : > { %v763_v57 = vmax.f32 %v721_v49, 0.0  ;;  %v783_v49 = vld [vmem:[%s1739_s5 + $0x30] sm:$0xff]  ;;  %v784_v54 = vld [vmem:[%s1739_s5 + $0x38] sm:$0xff] }
 0x1b3   : > { %v764_v59 = vmax.f32 %v723_v55, 0.0  ;;  %v726_v60 = vpop.f32.mrb[4].mxu0 }
 0x1b4   : > { %v728_v61 = vpop.f32.mrb[5].mxu0  ;;  %v1203_v62 = vpack.c.bf16 %v763_v57, %v761_v56  ;;  %v727_v1 = vadd.f32 %v726_v60, %v596_v63  ;;  %v796_v57 = vpop.permute.xlu0 %795 }
 0x1b5   : > { %v1201_v0 = vpack.c.bf16 %v764_v59, %v762_v58  ;;  %v729_v4 = vadd.f32 %v728_v61, %v596_v63  ;;  %v801_v59 = vpop.permute.xlu1 %800 }
 0x1b6   : > { %v765_v9 = vmax.f32 %v727_v1, 0.0 }
 0x1b7   : > { %v732_v5 = vpop.f32.mrb[6].mxu0  ;;  %1202 = vmatprep.subr.bf16.mxu1 %v1201_v0  ;;  %v766_v10 = vmax.f32 %v729_v4, 0.0 }
 0x1b8   : > { %v733_v6 = vadd.f32 %v732_v5, %v601_v2  ;;  %v734_v7 = vpop.f32.mrb[7].mxu0  ;;  %1204 = vmatpush1.bf16.msra.mxu1 %v1203_v62 }
 0x1b9   : > { %v735_v8 = vadd.f32 %v734_v7, %v601_v2 }
 0x1ba   : > { %v767_v40 = vmax.f32 %v733_v6, 0.0 }
 0x1bb   : > { %v768_v3 = vmax.f32 %v735_v8, 0.0  ;;  %v738_v11 = vpop.f32.mrb[8].mxu0  ;;  %v806_v8 = vpop.permute.xlu0 %805 }
 0x1bc   : > { %v1207_v12 = vpack.c.bf16 %v767_v40, %v765_v9  ;;  %v740_v13 = vpop.f32.mrb[9].mxu0  ;;  %v739_v16 = vadd.f32 %v738_v11, %v606_v14 }
 0x1bd   : > { %v1205_v15 = vpack.c.bf16 %v768_v3, %v766_v10  ;;  %v741_v18 = vadd.f32 %v740_v13, %v606_v14  ;;  %v811_v10 = vpop.permute.xlu1 %810 }
 0x1be   : > { %v769_v23 = vmax.f32 %v739_v16, 0.0 }
 0x1bf   : > { %v744_v19 = vpop.f32.mrb[10].mxu0  ;;  %1206 = vmatprep.subr.bf16.mxu1 %v1205_v15  ;;  %v770_v42 = vmax.f32 %v741_v18, 0.0 }
 0x1c0   : > { %v745_v20 = vadd.f32 %v744_v19, %v611_v17  ;;  %v746_v21 = vpop.f32.mrb[11].mxu0  ;;  %1208 = vmatpush1.bf16.msra.mxu1 %v1207_v12 }
 0x1c1   : > { %v747_v22 = vadd.f32 %v746_v21, %v611_v17 }
 0x1c2   : > { %v771_v24 = vmax.f32 %v745_v20, 0.0 }
 0x1c3   : > { %v772_v25 = vmax.f32 %v747_v22, 0.0  ;;  %v750_v26 = vpop.f32.mrb[12].mxu0  ;;  %v816_v22 = vpop.permute.xlu0 %815 }
 0x1c4   : > { %v1211_v50 = vpack.c.bf16 %v771_v24, %v769_v23  ;;  %v752_v51 = vpop.f32.mrb[13].mxu0  ;;  %v751_v30 = vadd.f32 %v750_v26, %v616_v27 }
 0x1c5   : > { %v1209_v28 = vpack.c.bf16 %v772_v25, %v770_v42  ;;  %v753_v32 = vadd.f32 %v752_v51, %v616_v27  ;;  %v821_v42 = vpop.permute.xlu1 %820 }
 0x1c6   : > { %v773_v35 = vmax.f32 %v751_v30, 0.0 }
 0x1c7   : > { %v756_v33 = vpop.f32.mrb[14].mxu0  ;;  %1210 = vmatprep.subr.bf16.mxu1 %v1209_v28  ;;  %v774_v37 = vmax.f32 %v753_v32, 0.0 }
 0x1c8   : > { %v757_v52 = vadd.f32 %v756_v33, %v621_v31  ;;  %v758_v53 = vpop.f32.mrb[15].mxu0  ;;  %1212 = vmatpush1.bf16.msra.mxu1 %v1211_v50 }
 0x1c9   : > { %v759_v34 = vadd.f32 %v758_v53, %v621_v31 }
 0x1ca   : > { %v775_v36 = vmax.f32 %v757_v52, 0.0 }
 0x1cb   : > { %v776_v38 = vmax.f32 %v759_v34, 0.0  ;;  %v826_v34 = vpop.permute.xlu0 %825 }
 0x1cc   : > { %v1215_v39 = vpack.c.bf16 %v775_v36, %v773_v35 }
 0x1cd   : > { %v1213_v41 = vpack.c.bf16 %v776_v38, %v774_v37  ;;  %v831_v37 = vpop.permute.xlu1 %830 }
 0x1cf   : > { %1214 = vmatprep.subr.bf16.mxu1 %v1213_v41 }
 0x1d0   : > { %1216 = vmatpush1.bf16.msra.mxu1 %v1215_v39 }
 0x1d3   : > { %1169 = vmatmul.mubr.msk.f32.vlgmr.msra.gmra.mrb[0].mxu1 %vm623_vm0, %v777_v43 }
 0x1d4   : > { %927 = vmatprep.mubr.f32.mxu1 %v1351_v29 }
 0x1d7   : > { %1170 = vmatmul.mubr.msk.f32.gmra.mrb[2].mxu1 %vm623_vm0, %v778_v44 }
 0x1d8   : > { %933 = vmatprep.mubr.f32.mxu1 %v1351_v29 }
 0x1db   : > { %1171 = vmatmul.mubr.msk.f32.gmra.mrb[4].mxu1 %vm623_vm0, %v779_v45 }
 0x1dc   : > { %939 = vmatprep.mubr.f32.mxu1 %v1351_v29 }
 0x1df   : > { %1172 = vmatmul.mubr.msk.f32.gmra.mrb[6].mxu1 %vm623_vm0, %v780_v46 }
 0x1e0   : > { %945 = vmatprep.mubr.f32.mxu1 %v1351_v29 }
 0x1e3   : > { %1173 = vmatmul.mubr.msk.f32.gmra.mrb[8].mxu1 %vm623_vm0, %v781_v47 }
 0x1e4   : > { %951 = vmatprep.mubr.f32.mxu1 %v1351_v29 }
 0x1e7   : > { %1174 = vmatmul.mubr.msk.f32.gmra.mrb[10].mxu1 %vm623_vm0, %v782_v48 }
 0x1e8   : > { %957 = vmatprep.mubr.f32.mxu1 %v1351_v29 }
 0x1eb   : > { %1175 = vmatmul.mubr.msk.f32.gmra.mrb[12].mxu1 %vm623_vm0, %v783_v49 }
 0x1ec   : > { %963 = vmatprep.mubr.f32.mxu1 %v1351_v29 }
 0x1ef   : > { %1176 = vmatmul.mubr.msk.f32.gmra.mrb[14].mxu1 %vm623_vm0, %v784_v54 }
 0x2a6   : > { %v923_v55 = vpop.f32.mrb[0].mxu1 }
 0x2a7   : > { %v925_v56 = vpop.f32.mrb[1].mxu1  ;;  %v924_v58 = vadd.f32 %v923_v55, %v796_v57  ;;  %v986_v55 = vld [vmem:[%s1741_s7] sm:$0x3] }
 0x2a8   : > { %v926_v60 = vadd.f32 %v925_v56, %v796_v57  ;;  %v991_v56 = vpop.permute.xlu0 %990 }
 0x2a9   : > { %v970_v1 = vmax.f32 %v924_v58, 0.0 }
 0x2aa   : > { %v929_v61 = vpop.f32.mrb[2].mxu1  ;;  %v971_v4 = vmax.f32 %v926_v60, 0.0 }
 0x2ab   : > { %v930_v62 = vadd.f32 %v929_v61, %v801_v59  ;;  %v931_v63 = vpop.f32.mrb[3].mxu1 }
 0x2ac   : > { %v932_v0 = vadd.f32 %v931_v63, %v801_v59 }
 0x2ad   : > { %v972_v2 = vmax.f32 %v930_v62, 0.0 }
 0x2ae   : > { %v973_v29 = vmax.f32 %v932_v0, 0.0  ;;  %v935_v5 = vpop.f32.mrb[4].mxu1 }
 0x2af   : > { %v1219_v6 = vpack.c.bf16 %v972_v2, %v970_v1  ;;  %v937_v7 = vpop.f32.mrb[5].mxu1  ;;  %v936_v40 = vadd.f32 %v935_v5, %v806_v8 }
 0x2b0   : > { %v1217_v9 = vpack.c.bf16 %v973_v29, %v971_v4  ;;  %v938_v3 = vadd.f32 %v937_v7, %v806_v8 }
 0x2b1   : > { %v974_v15 = vmax.f32 %v936_v40, 0.0 }
 0x2b2   : > { %v941_v11 = vpop.f32.mrb[6].mxu1  ;;  %1218 = vmatprep.subr.bf16.mxu0 %v1217_v9  ;;  %v975_v17 = vmax.f32 %v938_v3, 0.0 }
 0x2b3   : > { %v942_v12 = vadd.f32 %v941_v11, %v811_v10  ;;  %v943_v13 = vpop.f32.mrb[7].mxu1  ;;  %1220 = vmatpush1.bf16.msra.mxu0 %v1219_v6 }
 0x2b4   : > { %v944_v14 = vadd.f32 %v943_v13, %v811_v10 }
 0x2b5   : > { %v976_v16 = vmax.f32 %v942_v12, 0.0 }
 0x2b6   : > { %v977_v18 = vmax.f32 %v944_v14, 0.0  ;;  %v947_v19 = vpop.f32.mrb[8].mxu1 }
 0x2b7   : > { %v1223_v20 = vpack.c.bf16 %v976_v16, %v974_v15  ;;  %v949_v21 = vpop.f32.mrb[9].mxu1  ;;  %v948_v24 = vadd.f32 %v947_v19, %v816_v22 }
 0x2b8   : > { %v1221_v23 = vpack.c.bf16 %v977_v18, %v975_v17  ;;  %v950_v25 = vadd.f32 %v949_v21, %v816_v22 }
 0x2b9   : > { %v978_v28 = vmax.f32 %v948_v24, 0.0 }
 0x2ba   : > { %v953_v26 = vpop.f32.mrb[10].mxu1  ;;  %1222 = vmatprep.subr.bf16.mxu0 %v1221_v23  ;;  %v979_v31 = vmax.f32 %v950_v25, 0.0 }
 0x2bb   : > { %v954_v50 = vadd.f32 %v953_v26, %v821_v42  ;;  %v955_v51 = vpop.f32.mrb[11].mxu1  ;;  %1224 = vmatpush1.bf16.msra.mxu0 %v1223_v20 }
 0x2bc   : > { %v956_v27 = vadd.f32 %v955_v51, %v821_v42 }
 0x2bd   : > { %v980_v30 = vmax.f32 %v954_v50, 0.0 }
 0x2be   : > { %v981_v32 = vmax.f32 %v956_v27, 0.0  ;;  %v959_v33 = vpop.f32.mrb[12].mxu1 }
 0x2bf   : > { %v1227_v52 = vpack.c.bf16 %v980_v30, %v978_v28  ;;  %v961_v53 = vpop.f32.mrb[13].mxu1  ;;  %v960_v36 = vadd.f32 %v959_v33, %v826_v34 }
 0x2c0   : > { %v1225_v35 = vpack.c.bf16 %v981_v32, %v979_v31  ;;  %v962_v38 = vadd.f32 %v961_v53, %v826_v34 }
 0x2c1   : > { %v982_v45 = vmax.f32 %v960_v36, 0.0 }
 0x2c2   : > { %v965_v39 = vpop.f32.mrb[14].mxu1  ;;  %1226 = vmatprep.subr.bf16.mxu0 %v1225_v35  ;;  %v983_v47 = vmax.f32 %v962_v38, 0.0 }
 0x2c3   : > { %v966_v41 = vadd.f32 %v965_v39, %v831_v37  ;;  %v967_v43 = vpop.f32.mrb[15].mxu1  ;;  %1228 = vmatpush1.bf16.msra.mxu0 %v1227_v52 }
 0x2c4   : > { %v968_v44 = vadd.f32 %v967_v43, %v831_v37 }
 0x2c5   : > { %v984_v46 = vmax.f32 %v966_v41, 0.0 }
 0x2c6   : > { %v985_v48 = vmax.f32 %v968_v44, 0.0 }
 0x2c7   : > { %v1231_v49 = vpack.c.bf16 %v984_v46, %v982_v45 }
 0x2c8   : > { %v1229_v54 = vpack.c.bf16 %v985_v48, %v983_v47 }
 0x2ca   : > { %1230 = vmatprep.subr.bf16.mxu0 %v1229_v54 }
 0x2cb   : > { %1232 = vmatpush1.bf16.msra.mxu0 %v1231_v49 }
 0x2ce   : > { %1177 = vmatmul.mubr.msk.f32.vlgmr.msra.gmra.mrb[16].mxu0 %vm623_vm0, %v986_v55 }
 0x3a1   : > { %v1062_v57 = vpop.f32.mrb[16].mxu0 }
 0x3a2   : > { %v1063_v58 = vadd.f32 %v1062_v57, %v991_v56  ;;  %v1064_v59 = vpop.f32.mrb[17].mxu0 }
 0x3a3   : > { %v1065_v60 = vadd.f32 %v1064_v59, %v991_v56 }
 0x3a5   : > { %v1069_v61 = vcombine.low %v1063_v58, %v1065_v60 }
 0x3a7   : > { %1178 = vst.sshfl [vmem:[%s326_s21] sm:$0x33 pattern:$0x76325410] %v1069_v61 }
 0x3a8   : > { %1298 = shalt.err (!%p1295_p3)
}
 0x3a9   : > { %s1299_s14 = scalar_lea.hbm %s1692_s25, 64  ;;  %s1303_s21 = scalar_lea.hbm %s1743_s9, 128 }
 0x3aa   : > { %p1300_p4 = scmp.ne.s32.totalorder %s1692_s25, %s1299_s14  ;;  %p1304_p9 = scmp.lt.u32.totalorder %s1692_s25, %s1743_s9 }
 0x3ab   : > { %p1305_p10 = scmp.lt.u32.totalorder %s1303_s21, %s1299_s14  ;;  %p1307_p12 = scmp.lt.u32.totalorder %s1299_s14, %s1692_s25 }
 0x3ac   : > { %p1301_p7 = pnand %p1300_p4, %p1441_p5 }
 0x3ad   : > { %p1306_p11 = por %p1305_p10, %p1304_p9 }
 0x3ae   : > { %p1302_p8 = pneg %p1301_p7 }
 0x3af   : > { %p1308_p13 = por %p1307_p12, %p1306_p11 }
 0x3b1   : > { %p1309_p0 = pnand %p1308_p13, %p1302_p8 }
 0x3b3   : > { %1312 = shalt.err (!%p1309_p0)
}
 0x3b4   : > { %1233 = dma.vmem_to_hbm [thread:$0]  (%p1441_p5), %s1694_s22, 64, %s1692_s25, %s1080_s26  }
 0x3b5 PF: > { %p1239_p1 = scmp.ge.s32.totalorder %s1347_s12, 2  ;;  %s1106_s27 = sand.u32 1, %s1335_s30  }
 0x3b6   : > { %s1107_s13 = scalar_lea.sflag [#allocation3], %s1106_s27 }
 0x3b7   : > { %p1236_p2 = pnand %p1239_p1, %p1445_p6 }
 0x3b9   : > { %1330 = dma.done.wait (!%p1236_p2), %s1107_s13, 64  }
 0x3ba   : > { %1332 = vsyncadd (!%p1236_p2), %s1107_s13, 4294967232  ;;  %p19_p3 = scmp.ge.s32.totalorder %s1428_s15, 4   ;;  %s1746_s30 = smov %s1339_s10 }
 0x3bb   : > { %s1747_s10 = smov %s1343_s11  ;;  %s1748_s11 = smov %s1439_s18 }
 0x3bc   : > { %s1749_s12 = smov %s1428_s15  ;;  %21 = sbr.rel (!%p19_p3) target bundleno = 3 (0x3), region = 92 }
 0x3c3   :  { %1112 = vsyncpa [#allocation3], 1 }
 0x3c4   :  { %1114 = vsyncpa [#allocation3 + $0x1], 1 }

</bundles_post_ra>
